<compile_context>
chip_gen: v7x
topology: tpu7x:2x2x1
jax: 0.10.0
libtpu: 0.0.40
codegen_flags: <defaults>
</compile_context>

<pallas_src>
import math

import jax
import jax.numpy as jnp
from jax.experimental import pallas as pl
from jax.experimental.pallas import tpu as pltpu


# ----------------------------- Pallas kernel --------------------------------
def rnd_kernel(x_ref, w0, w1, w2, w3, w4, w5, w6, w7, b_ref, out_ref):
    # obs tile, cast to bf16 once (MXU operand); elementwise work stays f32.
    x = x_ref[...].astype(jnp.bfloat16)                        # (TB, obs_dim)

    def dense(h_bf16, w_ref_, idx, relu):
        n = w_ref_.shape[-1]                                   # multiple of 128 -> free slice
        y = jnp.dot(h_bf16, w_ref_[...], preferred_element_type=jnp.float32)
        y = y + b_ref[idx][:, :n]
        if relu:
            y = jnp.maximum(y, 0.0)
        return y

    # predictor: obs -> 256 -> 256 -> out -> out -> out (ReLU between layers)
    h = dense(x, w0, 0, True).astype(jnp.bfloat16)
    h = dense(h, w1, 1, True).astype(jnp.bfloat16)
    h = dense(h, w2, 2, True).astype(jnp.bfloat16)
    h = dense(h, w3, 3, True).astype(jnp.bfloat16)
    p = dense(h, w4, 4, False)                                 # real cols [:out_dim]

    # frozen target: obs -> 64 -> 64 -> out (ReLU between layers)
    t = dense(x, w5, 5, True).astype(jnp.bfloat16)
    t = dense(t, w6, 6, True).astype(jnp.bfloat16)
    t = dense(t, w7, 7, False)                                 # real cols [out_dim:2*out_dim]

    # single dense 128-lane-aligned store: [predictor | target] via shifted packing
    out_ref[...] = (p + t).astype(out_ref.dtype)


# ------------------------------ packing --------------------------------------
def _round_up(x, m):
    return ((x + m - 1) // m) * m


def pack_params(params):
    """Pack each layer into its own exactly-padded bf16 weight buffer + one f32 bias buffer.

    Predictor final layer occupies output columns [:out_dim]; target final layer is
    SHIFTED into columns [out_dim:2*out_dim] so the kernel can emit one fused slab.
    """
    (w0p, b0p), (w1p, b1p), (w2p, b2p), (w3p, b3p), (w4p, b4p) = params["pred"]
    (w5t, b5t), (w6t, b6t), (w7t, b7t) = params["targ"]

    obs_dim, width = w0p.shape
    target_width = w5t.shape[1]
    out_dim = w4p.shape[1]

    W = _round_up(width, 128)              # predictor hidden width (256)
    TW = _round_up(target_width, 128)      # target hidden width (64 -> 128)
    OK = _round_up(out_dim, 128)           # internal out_dim-sized dims
    NO = _round_up(2 * out_dim, 128)       # fused output width
    MAXN = max(W, TW, OK, NO)

    def pad_w(w, rows, cols, col_off=0):
        buf = jnp.zeros((rows, cols), dtype=jnp.bfloat16)
        return buf.at[: w.shape[0], col_off:col_off + w.shape[1]].set(
            w.astype(jnp.bfloat16))

    weights = [
        pad_w(w0p, obs_dim, W),                 # L0: obs -> 256
        pad_w(w1p, W, W),                       # L1: 256 -> 256
        pad_w(w2p, W, OK),                      # L2: 256 -> out
        pad_w(w3p, OK, OK),                     # L3: out -> out
        pad_w(w4p, OK, NO),                     # L4: out -> out   (cols [:out_dim])
        pad_w(w5t, obs_dim, TW),                # T0: obs -> 64
        pad_w(w6t, TW, TW),                     # T1: 64 -> 64
        pad_w(w7t, TW, NO, col_off=out_dim),    # T2: 64 -> out    (cols [out_dim:2*out_dim])
    ]

    biases = jnp.zeros((8, 1, MAXN), dtype=jnp.float32)
    b_list = [b0p, b1p, b2p, b3p, b4p, b5t, b6t, b7t]
    offs = [0, 0, 0, 0, 0, 0, 0, out_dim]       # shift the target final bias too
    for i, (b, off) in enumerate(zip(b_list, offs)):
        bv = b.reshape(-1).astype(jnp.float32)
        biases = biases.at[i, 0, off:off + bv.shape[0]].set(bv)

    return weights, biases, out_dim, NO


# ------------------------------ wrapper --------------------------------------
def _choose_tile(B, max_tile):
    """Pick the batch tile: prefer >=2 grid steps (v7x megacore), then least padding,
    then the biggest tile (amortize per-step pipeline overhead)."""
    b8 = _round_up(B, 8)
    best_tile, best_key = None, None
    for cand in (2048, 1024, 512, 256, 128):
        if cand > max_tile:
            continue
        t = min(cand, b8)
        padded = _round_up(b8, t)
        key = (0 if padded // t >= 2 else 1, padded - b8, -t)
        if best_key is None or key < best_key:
            best_key, best_tile = key, t
    return best_tile if best_tile is not None else b8


def rnd_forward(next_obs, params, max_tile=2048):
    """params: dict with 'pred' (5 layers) and 'targ' (3 layers) lists of (W(in,out), b(1,out))."""
    B, obs_dim = next_obs.shape
    weights, biases, out_dim, n_out = pack_params(params)

    # keep double-buffered obs + out tiles well under the 32 MiB scoped VMEM budget
    bytes_per_row = 2 * 4 * (obs_dim + n_out)
    max_tile = min(max_tile, max(128, ((12 << 20) // max(bytes_per_row, 1)) // 8 * 8))

    tile = _choose_tile(B, max_tile)
    b_pad = _round_up(_round_up(B, 8), tile)
    x = next_obs if b_pad == B else jnp.pad(next_obs, ((0, b_pad - B), (0, 0)))

    in_specs = [pl.BlockSpec((tile, obs_dim), lambda i: (i, 0))]            # pipelined obs tile
    in_specs += [pl.BlockSpec(w.shape, lambda i: (0, 0)) for w in weights]  # VMEM-resident weights
    in_specs += [pl.BlockSpec(biases.shape, lambda i: (0, 0, 0))]           # VMEM-resident biases

    fused = pl.pallas_call(
        rnd_kernel,
        out_shape=jax.ShapeDtypeStruct((b_pad, n_out), jnp.float32),
        grid=(b_pad // tile,),
        in_specs=in_specs,
        out_specs=pl.BlockSpec((tile, n_out), lambda i: (i, 0)),
        compiler_params=pltpu.CompilerParams(
            dimension_semantics=("parallel",),          # megacore sharding on v7x
            vmem_limit_bytes=32 * 1024 * 1024),         # big tiles on v5e's 16 MiB default
    )(x, *weights, biases)

    return fused[:B, :out_dim], fused[:B, out_dim:2 * out_dim]


# -------------------------- deterministic init ------------------------------
def orthogonal_weight(key, out_dim, in_dim, gain):
    """Mirror torch.nn.init.orthogonal_ on a (out, in) weight, returned as (in, out)."""
    a = jax.random.normal(key, (out_dim, in_dim), dtype=jnp.float32)
    transposed = out_dim < in_dim
    if transposed:
        a = a.T
    q, r = jnp.linalg.qr(a)
    q = q * jnp.sign(jnp.diag(r))
    if transposed:
        q = q.T
    w = gain * q                      # torch layout: (out, in)
    return w.T                        # kernel layout: (in, out)


def make_params(key, obs_dim, output_size, width=256, target_width=64):
    gains_pred = [math.sqrt(2)] * 4 + [0.01]
    dims_pred = [(obs_dim, width), (width, width), (width, output_size),
                 (output_size, output_size), (output_size, output_size)]
    gains_targ = [math.sqrt(2)] * 3
    dims_targ = [(obs_dim, target_width), (target_width, target_width),
                 (target_width, output_size)]

    keys = jax.random.split(key, len(dims_pred) + len(dims_targ))
    pred, targ = [], []
    for i, ((din, dout), g) in enumerate(zip(dims_pred, gains_pred)):
        w = orthogonal_weight(keys[i], dout, din, g)
        pred.append((w, jnp.zeros((1, dout), dtype=jnp.float32)))
    for j, ((din, dout), g) in enumerate(zip(dims_targ, gains_targ)):
        w = orthogonal_weight(keys[len(dims_pred) + j], dout, din, g)
        targ.append((w, jnp.zeros((1, dout), dtype=jnp.float32)))
    return {"pred": pred, "targ": targ}


# ------------------------------ reference -----------------------------------
def rnd_reference(next_obs, params):
    def mlp(x, layers):
        h = x
        for i, (w, b) in enumerate(layers):
            h = h @ w + b
            if i < len(layers) - 1:
                h = jnp.maximum(h, 0.0)
        return h
    return mlp(next_obs, params["pred"]), mlp(next_obs, params["targ"])


# -------------------------------- main ---------------------------------------
if __name__ == "__main__":
    key = jax.random.PRNGKey(0)
    k_obs, k_params = jax.random.split(key)

    B, OBS_DIM, OUTPUT_SIZE = 8, 32, 64
    next_obs = jax.random.normal(k_obs, (B, OBS_DIM), dtype=jnp.float32)
    params = make_params(k_params, OBS_DIM, OUTPUT_SIZE)

    pred_feat, targ_feat = rnd_forward(next_obs, params)
    jax.block_until_ready((pred_feat, targ_feat))

    ref_pred, ref_targ = rnd_reference(next_obs, params)
    assert pred_feat.shape == (B, OUTPUT_SIZE) and targ_feat.shape == (B, OUTPUT_SIZE)
    # bf16 MXU operands (f32 accumulate) -> loosened tolerance vs f32 reference
    assert jnp.allclose(pred_feat, ref_pred, atol=5e-2, rtol=5e-2)
    assert jnp.allclose(targ_feat, ref_targ, atol=5e-2, rtol=5e-2)

    print("KERNEL_OK")
</pallas_src>

<mosaic_0001>
module attributes {stable_mosaic.version = 11 : i64} {
  func.func @rnd_kernel(%arg0: i32, %arg1: memref<8x32xf32, #tpu.memory_space<vmem>>, %arg2: memref<32x256xbf16, #tpu.memory_space<vmem>>, %arg3: memref<256x256xbf16, #tpu.memory_space<vmem>>, %arg4: memref<256x128xbf16, #tpu.memory_space<vmem>>, %arg5: memref<128x128xbf16, #tpu.memory_space<vmem>>, %arg6: memref<128x128xbf16, #tpu.memory_space<vmem>>, %arg7: memref<32x128xbf16, #tpu.memory_space<vmem>>, %arg8: memref<128x128xbf16, #tpu.memory_space<vmem>>, %arg9: memref<128x128xbf16, #tpu.memory_space<vmem>>, %arg10: memref<8x1x256xf32, #tpu.memory_space<vmem>>, %arg11: memref<8x128xf32, #tpu.memory_space<vmem>>) attributes {dimension_semantics = [#tpu.dimension_semantics<parallel>], iteration_bounds = array<i64: 1>, scalar_prefetch = 0 : i64, scratch_operands = 0 : i64, tpu.core_type = #tpu.core_type<tc>, window_params = [{transform_indices = @transform_0, window_bounds = array<i64: 8, 32>}, {pipeline_mode = #tpu.pipeline_mode<synchronous>, transform_indices = @transform_1, window_bounds = array<i64: 32, 256>}, {pipeline_mode = #tpu.pipeline_mode<synchronous>, transform_indices = @transform_2, window_bounds = array<i64: 256, 256>}, {pipeline_mode = #tpu.pipeline_mode<synchronous>, transform_indices = @transform_3, window_bounds = array<i64: 256, 128>}, {pipeline_mode = #tpu.pipeline_mode<synchronous>, transform_indices = @transform_4, window_bounds = array<i64: 128, 128>}, {pipeline_mode = #tpu.pipeline_mode<synchronous>, transform_indices = @transform_5, window_bounds = array<i64: 128, 128>}, {pipeline_mode = #tpu.pipeline_mode<synchronous>, transform_indices = @transform_6, window_bounds = array<i64: 32, 128>}, {pipeline_mode = #tpu.pipeline_mode<synchronous>, transform_indices = @transform_7, window_bounds = array<i64: 128, 128>}, {pipeline_mode = #tpu.pipeline_mode<synchronous>, transform_indices = @transform_8, window_bounds = array<i64: 128, 128>}, {pipeline_mode = #tpu.pipeline_mode<synchronous>, transform_indices = @transform_9, window_bounds = array<i64: 8, 1, 256>}, {transform_indices = @transform_10, window_bounds = array<i64: 8, 128>}]} {
    %c0 = arith.constant 0 : index
    %c0_0 = arith.constant 0 : index
    %0 = vector.load %arg1[%c0, %c0_0] : memref<8x32xf32, #tpu.memory_space<vmem>>, vector<8x32xf32>
    %1 = arith.truncf %0 : vector<8x32xf32> to vector<8x32xbf16>
    %c0_1 = arith.constant 0 : index
    %c0_2 = arith.constant 0 : index
    %2 = vector.load %arg2[%c0_1, %c0_2] : memref<32x256xbf16, #tpu.memory_space<vmem>>, vector<32x256xbf16>
    %cst = arith.constant dense<0.000000e+00> : vector<8x256xf32>
    %3 = tpu.matmul %1, %2, %cst {dimension_numbers = #tpu.dot_dimension_numbers<[1], [0], [0], [1], [0, 0, 1, 1], [], []>} : vector<8x32xbf16>, vector<32x256xbf16>, vector<8x256xf32> -> vector<8x256xf32>
    %c0_3 = arith.constant 0 : index
    %c0_4 = arith.constant 0 : index
    %c0_5 = arith.constant 0 : index
    %4 = vector.load %arg10[%c0_3, %c0_4, %c0_5] : memref<8x1x256xf32, #tpu.memory_space<vmem>>, vector<1x1x256xf32>
    %5 = vector.shape_cast %4 : vector<1x1x256xf32> to vector<1x256xf32>
    %6 = vector.broadcast %5 : vector<1x256xf32> to vector<8x256xf32>
    %7 = arith.addf %3, %6 : vector<8x256xf32>
    %cst_6 = arith.constant 0.000000e+00 : f32
    %8 = vector.broadcast %cst_6 : f32 to vector<8x256xf32>
    %9 = arith.maximumf %7, %8 : vector<8x256xf32>
    %10 = arith.truncf %9 : vector<8x256xf32> to vector<8x256xbf16>
    %c0_7 = arith.constant 0 : index
    %c0_8 = arith.constant 0 : index
    %11 = vector.load %arg3[%c0_7, %c0_8] : memref<256x256xbf16, #tpu.memory_space<vmem>>, vector<256x256xbf16>
    %cst_9 = arith.constant dense<0.000000e+00> : vector<8x256xf32>
    %12 = tpu.matmul %10, %11, %cst_9 {dimension_numbers = #tpu.dot_dimension_numbers<[1], [0], [0], [1], [0, 0, 1, 1], [], []>} : vector<8x256xbf16>, vector<256x256xbf16>, vector<8x256xf32> -> vector<8x256xf32>
    %c1 = arith.constant 1 : index
    %c0_10 = arith.constant 0 : index
    %c0_11 = arith.constant 0 : index
    %13 = vector.load %arg10[%c1, %c0_10, %c0_11] : memref<8x1x256xf32, #tpu.memory_space<vmem>>, vector<1x1x256xf32>
    %14 = vector.shape_cast %13 : vector<1x1x256xf32> to vector<1x256xf32>
    %15 = vector.broadcast %14 : vector<1x256xf32> to vector<8x256xf32>
    %16 = arith.addf %12, %15 : vector<8x256xf32>
    %cst_12 = arith.constant 0.000000e+00 : f32
    %17 = vector.broadcast %cst_12 : f32 to vector<8x256xf32>
    %18 = arith.maximumf %16, %17 : vector<8x256xf32>
    %19 = arith.truncf %18 : vector<8x256xf32> to vector<8x256xbf16>
    %c0_13 = arith.constant 0 : index
    %c0_14 = arith.constant 0 : index
    %20 = vector.load %arg4[%c0_13, %c0_14] : memref<256x128xbf16, #tpu.memory_space<vmem>>, vector<256x128xbf16>
    %cst_15 = arith.constant dense<0.000000e+00> : vector<8x128xf32>
    %21 = tpu.matmul %19, %20, %cst_15 {dimension_numbers = #tpu.dot_dimension_numbers<[1], [0], [0], [1], [0, 0, 1, 1], [], []>} : vector<8x256xbf16>, vector<256x128xbf16>, vector<8x128xf32> -> vector<8x128xf32>
    %c2 = arith.constant 2 : index
    %c0_16 = arith.constant 0 : index
    %c0_17 = arith.constant 0 : index
    %22 = vector.load %arg10[%c2, %c0_16, %c0_17] : memref<8x1x256xf32, #tpu.memory_space<vmem>>, vector<1x1x256xf32>
    %23 = vector.shape_cast %22 : vector<1x1x256xf32> to vector<1x256xf32>
    %24 = vector.extract_strided_slice %23 {offsets = [0, 0], sizes = [1, 128], strides = [1, 1]} : vector<1x256xf32> to vector<1x128xf32>
    %25 = vector.broadcast %24 : vector<1x128xf32> to vector<8x128xf32>
    %26 = arith.addf %21, %25 : vector<8x128xf32>
    %cst_18 = arith.constant 0.000000e+00 : f32
    %27 = vector.broadcast %cst_18 : f32 to vector<8x128xf32>
    %28 = arith.maximumf %26, %27 : vector<8x128xf32>
    %29 = arith.truncf %28 : vector<8x128xf32> to vector<8x128xbf16>
    %c0_19 = arith.constant 0 : index
    %c0_20 = arith.constant 0 : index
    %30 = vector.load %arg5[%c0_19, %c0_20] : memref<128x128xbf16, #tpu.memory_space<vmem>>, vector<128x128xbf16>
    %cst_21 = arith.constant dense<0.000000e+00> : vector<8x128xf32>
    %31 = tpu.matmul %29, %30, %cst_21 {dimension_numbers = #tpu.dot_dimension_numbers<[1], [0], [0], [1], [0, 0, 1, 1], [], []>} : vector<8x128xbf16>, vector<128x128xbf16>, vector<8x128xf32> -> vector<8x128xf32>
    %c3 = arith.constant 3 : index
    %c0_22 = arith.constant 0 : index
    %c0_23 = arith.constant 0 : index
    %32 = vector.load %arg10[%c3, %c0_22, %c0_23] : memref<8x1x256xf32, #tpu.memory_space<vmem>>, vector<1x1x256xf32>
    %33 = vector.shape_cast %32 : vector<1x1x256xf32> to vector<1x256xf32>
    %34 = vector.extract_strided_slice %33 {offsets = [0, 0], sizes = [1, 128], strides = [1, 1]} : vector<1x256xf32> to vector<1x128xf32>
    %35 = vector.broadcast %34 : vector<1x128xf32> to vector<8x128xf32>
    %36 = arith.addf %31, %35 : vector<8x128xf32>
    %cst_24 = arith.constant 0.000000e+00 : f32
    %37 = vector.broadcast %cst_24 : f32 to vector<8x128xf32>
    %38 = arith.maximumf %36, %37 : vector<8x128xf32>
    %39 = arith.truncf %38 : vector<8x128xf32> to vector<8x128xbf16>
    %c0_25 = arith.constant 0 : index
    %c0_26 = arith.constant 0 : index
    %40 = vector.load %arg6[%c0_25, %c0_26] : memref<128x128xbf16, #tpu.memory_space<vmem>>, vector<128x128xbf16>
    %cst_27 = arith.constant dense<0.000000e+00> : vector<8x128xf32>
    %41 = tpu.matmul %39, %40, %cst_27 {dimension_numbers = #tpu.dot_dimension_numbers<[1], [0], [0], [1], [0, 0, 1, 1], [], []>} : vector<8x128xbf16>, vector<128x128xbf16>, vector<8x128xf32> -> vector<8x128xf32>
    %c4 = arith.constant 4 : index
    %c0_28 = arith.constant 0 : index
    %c0_29 = arith.constant 0 : index
    %42 = vector.load %arg10[%c4, %c0_28, %c0_29] : memref<8x1x256xf32, #tpu.memory_space<vmem>>, vector<1x1x256xf32>
    %43 = vector.shape_cast %42 : vector<1x1x256xf32> to vector<1x256xf32>
    %44 = vector.extract_strided_slice %43 {offsets = [0, 0], sizes = [1, 128], strides = [1, 1]} : vector<1x256xf32> to vector<1x128xf32>
    %45 = vector.broadcast %44 : vector<1x128xf32> to vector<8x128xf32>
    %46 = arith.addf %41, %45 : vector<8x128xf32>
    %c0_30 = arith.constant 0 : index
    %c0_31 = arith.constant 0 : index
    %47 = vector.load %arg7[%c0_30, %c0_31] : memref<32x128xbf16, #tpu.memory_space<vmem>>, vector<32x128xbf16>
    %cst_32 = arith.constant dense<0.000000e+00> : vector<8x128xf32>
    %48 = tpu.matmul %1, %47, %cst_32 {dimension_numbers = #tpu.dot_dimension_numbers<[1], [0], [0], [1], [0, 0, 1, 1], [], []>} : vector<8x32xbf16>, vector<32x128xbf16>, vector<8x128xf32> -> vector<8x128xf32>
    %c5 = arith.constant 5 : index
    %c0_33 = arith.constant 0 : index
    %c0_34 = arith.constant 0 : index
    %49 = vector.load %arg10[%c5, %c0_33, %c0_34] : memref<8x1x256xf32, #tpu.memory_space<vmem>>, vector<1x1x256xf32>
    %50 = vector.shape_cast %49 : vector<1x1x256xf32> to vector<1x256xf32>
    %51 = vector.extract_strided_slice %50 {offsets = [0, 0], sizes = [1, 128], strides = [1, 1]} : vector<1x256xf32> to vector<1x128xf32>
    %52 = vector.broadcast %51 : vector<1x128xf32> to vector<8x128xf32>
    %53 = arith.addf %48, %52 : vector<8x128xf32>
    %cst_35 = arith.constant 0.000000e+00 : f32
    %54 = vector.broadcast %cst_35 : f32 to vector<8x128xf32>
    %55 = arith.maximumf %53, %54 : vector<8x128xf32>
    %56 = arith.truncf %55 : vector<8x128xf32> to vector<8x128xbf16>
    %c0_36 = arith.constant 0 : index
    %c0_37 = arith.constant 0 : index
    %57 = vector.load %arg8[%c0_36, %c0_37] : memref<128x128xbf16, #tpu.memory_space<vmem>>, vector<128x128xbf16>
    %cst_38 = arith.constant dense<0.000000e+00> : vector<8x128xf32>
    %58 = tpu.matmul %56, %57, %cst_38 {dimension_numbers = #tpu.dot_dimension_numbers<[1], [0], [0], [1], [0, 0, 1, 1], [], []>} : vector<8x128xbf16>, vector<128x128xbf16>, vector<8x128xf32> -> vector<8x128xf32>
    %c6 = arith.constant 6 : index
    %c0_39 = arith.constant 0 : index
    %c0_40 = arith.constant 0 : index
    %59 = vector.load %arg10[%c6, %c0_39, %c0_40] : memref<8x1x256xf32, #tpu.memory_space<vmem>>, vector<1x1x256xf32>
    %60 = vector.shape_cast %59 : vector<1x1x256xf32> to vector<1x256xf32>
    %61 = vector.extract_strided_slice %60 {offsets = [0, 0], sizes = [1, 128], strides = [1, 1]} : vector<1x256xf32> to vector<1x128xf32>
    %62 = vector.broadcast %61 : vector<1x128xf32> to vector<8x128xf32>
    %63 = arith.addf %58, %62 : vector<8x128xf32>
    %cst_41 = arith.constant 0.000000e+00 : f32
    %64 = vector.broadcast %cst_41 : f32 to vector<8x128xf32>
    %65 = arith.maximumf %63, %64 : vector<8x128xf32>
    %66 = arith.truncf %65 : vector<8x128xf32> to vector<8x128xbf16>
    %c0_42 = arith.constant 0 : index
    %c0_43 = arith.constant 0 : index
    %67 = vector.load %arg9[%c0_42, %c0_43] : memref<128x128xbf16, #tpu.memory_space<vmem>>, vector<128x128xbf16>
    %cst_44 = arith.constant dense<0.000000e+00> : vector<8x128xf32>
    %68 = tpu.matmul %66, %67, %cst_44 {dimension_numbers = #tpu.dot_dimension_numbers<[1], [0], [0], [1], [0, 0, 1, 1], [], []>} : vector<8x128xbf16>, vector<128x128xbf16>, vector<8x128xf32> -> vector<8x128xf32>
    %c7 = arith.constant 7 : index
    %c0_45 = arith.constant 0 : index
    %c0_46 = arith.constant 0 : index
    %69 = vector.load %arg10[%c7, %c0_45, %c0_46] : memref<8x1x256xf32, #tpu.memory_space<vmem>>, vector<1x1x256xf32>
    %70 = vector.shape_cast %69 : vector<1x1x256xf32> to vector<1x256xf32>
    %71 = vector.extract_strided_slice %70 {offsets = [0, 0], sizes = [1, 128], strides = [1, 1]} : vector<1x256xf32> to vector<1x128xf32>
    %72 = vector.broadcast %71 : vector<1x128xf32> to vector<8x128xf32>
    %73 = arith.addf %68, %72 : vector<8x128xf32>
    %74 = arith.addf %46, %73 : vector<8x128xf32>
    %c0_47 = arith.constant 0 : index
    %c0_48 = arith.constant 0 : index
    %75 = vector.load %arg11[%c0_47, %c0_48] : memref<8x128xf32, #tpu.memory_space<vmem>>, vector<8x128xf32>
    tpu.vector_store %arg11[%c0_47, %c0_48], %74 {strides = array<i32>} : memref<8x128xf32, #tpu.memory_space<vmem>>, vector<8x128xf32>,
    return
  }
  func.func @transform_0(%arg0: i32) -> (i32, i32) {
    %c0_i32 = arith.constant 0 : i32
    %c0_i32_0 = arith.constant 0 : i32
    return %arg0, %c0_i32 : i32, i32
  }
  func.func @transform_1(%arg0: i32) -> (i32, i32) {
    %c0_i32 = arith.constant 0 : i32
    %c0_i32_0 = arith.constant 0 : i32
    %c0_i32_1 = arith.constant 0 : i32
    return %c0_i32, %c0_i32_0 : i32, i32
  }
  func.func @transform_2(%arg0: i32) -> (i32, i32) {
    %c0_i32 = arith.constant 0 : i32
    %c0_i32_0 = arith.constant 0 : i32
    %c0_i32_1 = arith.constant 0 : i32
    return %c0_i32, %c0_i32_0 : i32, i32
  }
  func.func @transform_3(%arg0: i32) -> (i32, i32) {
    %c0_i32 = arith.constant 0 : i32
    %c0_i32_0 = arith.constant 0 : i32
    %c0_i32_1 = arith.constant 0 : i32
    return %c0_i32, %c0_i32_0 : i32, i32
  }
  func.func @transform_4(%arg0: i32) -> (i32, i32) {
    %c0_i32 = arith.constant 0 : i32
    %c0_i32_0 = arith.constant 0 : i32
    %c0_i32_1 = arith.constant 0 : i32
    return %c0_i32, %c0_i32_0 : i32, i32
  }
  func.func @transform_5(%arg0: i32) -> (i32, i32) {
    %c0_i32 = arith.constant 0 : i32
    %c0_i32_0 = arith.constant 0 : i32
    %c0_i32_1 = arith.constant 0 : i32
    return %c0_i32, %c0_i32_0 : i32, i32
  }
  func.func @transform_6(%arg0: i32) -> (i32, i32) {
    %c0_i32 = arith.constant 0 : i32
    %c0_i32_0 = arith.constant 0 : i32
    %c0_i32_1 = arith.constant 0 : i32
    return %c0_i32, %c0_i32_0 : i32, i32
  }
  func.func @transform_7(%arg0: i32) -> (i32, i32) {
    %c0_i32 = arith.constant 0 : i32
    %c0_i32_0 = arith.constant 0 : i32
    %c0_i32_1 = arith.constant 0 : i32
    return %c0_i32, %c0_i32_0 : i32, i32
  }
  func.func @transform_8(%arg0: i32) -> (i32, i32) {
    %c0_i32 = arith.constant 0 : i32
    %c0_i32_0 = arith.constant 0 : i32
    %c0_i32_1 = arith.constant 0 : i32
    return %c0_i32, %c0_i32_0 : i32, i32
  }
  func.func @transform_9(%arg0: i32) -> (i32, i32, i32) {
    %c0_i32 = arith.constant 0 : i32
    %c0_i32_0 = arith.constant 0 : i32
    %c0_i32_1 = arith.constant 0 : i32
    %c0_i32_2 = arith.constant 0 : i32
    return %c0_i32, %c0_i32_0, %c0_i32_1 : i32, i32, i32
  }
  func.func @transform_10(%arg0: i32) -> (i32, i32) {
    %c0_i32 = arith.constant 0 : i32
    %c0_i32_0 = arith.constant 0 : i32
    return %arg0, %c0_i32 : i32, i32
  }
}

</mosaic_0001>

<bundles_post_ra>
// kernel: tpu_custom_call.1
= control target key start
LH: loop header
LB: loop body
LE: loop exit
PB: predicated region body
PF: predicated region fallthrough
CT: control target
= control target key end

     0   :  { %15 = vsyncpa [#allocation3], 0  ;;  %s2082_s0 = inlined_call_operand.hbm [shape: f32[8,32], index: 0, kind: input, shape index: {}]   ;;  %s2083_s1 = inlined_call_operand.hbm [shape: bf16[32,256], index: 1, kind: input, shape index: {}]   ;;  %s2084_s2 = inlined_call_operand.hbm [shape: bf16[256,256], index: 2, kind: input, shape index: {}]   ;;  %s2085_s3 = inlined_call_operand.hbm [shape: bf16[256,128], index: 3, kind: input, shape index: {}]   ;;  %s2086_s4 = inlined_call_operand.hbm [shape: bf16[128,128], index: 4, kind: input, shape index: {}]   ;;  %s2087_s5 = inlined_call_operand.hbm [shape: bf16[128,128], index: 5, kind: input, shape index: {}]   ;;  %s2088_s6 = inlined_call_operand.vmem [shape: bf16[32,128], index: 6, kind: input, shape index: {}]   ;;  %s2089_s7 = inlined_call_operand.hbm [shape: bf16[128,128], index: 7, kind: input, shape index: {}]   ;;  %s2090_s8 = inlined_call_operand.hbm [shape: bf16[128,128], index: 8, kind: input, shape index: {}]   ;;  %s2091_s9 = inlined_call_operand.vmem [shape: f32[8,1,256], index: 9, kind: input, shape index: {}]   ;;  %s2092_s10 = inlined_call_operand.hbm [shape: f32[8,128], index: 10, kind: output, shape index: {}]  }
   0x1   :  { %16 = vsyncpa [#allocation6], 0 }
   0x2   :  { %17 = vsyncpa [#allocation9], 0 }
   0x3   :  { %18 = vsyncpa [#allocation12], 0 }
   0x4   :  { %19 = vsyncpa [#allocation15], 0 }
   0x5   :  { %20 = vsyncpa [#allocation4], 0  ;;  %s1778_s13 = smov [#allocation5]   ;;  %s1568_s17 = scalar_lea.hbm %s2083_s1, 512 }
   0x6   :  { %s36_s14 = sshll.u32 %s1778_s13, 4  ;;  %p1569_p0 = scmp.ne.s32.totalorder %s2083_s1, %s1568_s17  ;;  %s37_s14 = int_to_ptr.vmem [resolvable:$true] %s36_s14 }
   0x7   :  { %p1572_p1 = scmp.lt.u32.totalorder %s1568_s17, %s2083_s1 }
   0x9   :  { %p1574_p2 = pnand %p1572_p1, %p1569_p0 }
   0xb   :  { %1577 = shalt.err (!%p1574_p2)
}
   0xc   :  { %s1578_s22 = scalar_lea.vmem %s37_s14, 512  ;;  %p1583_p4 = scmp.lt.s32.totalorder %s37_s14, %s37_s14 }
   0xd   :  { %p1579_p3 = scmp.ne.s32.totalorder %s37_s14, %s1578_s22  ;;  %p1584_p5 = scmp.lt.s32.totalorder %s1578_s22, %s1578_s22 }
   0xf   :  { %p1585_p6 = por %p1584_p5, %p1583_p4 }
  0x11   :  { %p1586_p7 = pnand %p1585_p6, %p1579_p3 }
  0x13   :  { %1589 = shalt.err (!%p1586_p7)
}
  0x14   :  { %s1779_s23 = smov 128   ;;  %s1780_s24 = smov 8  }
  0x15   :  { %42 = dma.hbm_to_vmem [thread:$0]  %s2083_s1, 512, %s37_s14, [#allocation6], %s1779_s23, %s1779_s23, %s1780_s24  }
  0x16   :  { %s1781_s27 = smov [#allocation8]   ;;  %s1590_s11 = scalar_lea.hbm %s2085_s3, 2048 }
  0x17   :  { %s60_s28 = sshll.u32 %s1781_s27, 4  ;;  %p1591_p8 = scmp.ne.s32.totalorder %s2085_s3, %s1590_s11  ;;  %s61_s28 = int_to_ptr.vmem [resolvable:$true] %s60_s28 }
  0x18   :  { %p1594_p9 = scmp.lt.u32.totalorder %s1590_s11, %s2085_s3 }
  0x1a   :  { %p1596_p10 = pnand %p1594_p9, %p1591_p8 }
  0x1c   :  { %1599 = shalt.err (!%p1596_p10)
}
  0x1d   :  { %s1600_s17 = scalar_lea.vmem %s61_s28, 2048  ;;  %p1605_p12 = scmp.lt.s32.totalorder %s61_s28, %s61_s28 }
  0x1e   :  { %p1601_p11 = scmp.ne.s32.totalorder %s61_s28, %s1600_s17  ;;  %p1606_p13 = scmp.lt.s32.totalorder %s1600_s17, %s1600_s17 }
  0x20   :  { %p1607_p0 = por %p1606_p13, %p1605_p12 }
  0x22   :  { %p1608_p1 = pnand %p1607_p0, %p1601_p11 }
  0x24   :  { %1611 = shalt.err (!%p1608_p1)
}
  0x25   :  { %s1782_s1 = smov 64   ;;  %s1783_s14 = smov 4  }
  0x26   :  { %66 = dma.hbm_to_vmem [thread:$0]  %s2085_s3, 2048, %s61_s28, [#allocation9], %s1782_s1, %s1782_s1, %s1783_s14  }
  0x27   :  { %s1784_s20 = smov [#allocation11]   ;;  %s1785_s22 = smov [#allocation2]  }
  0x28   :  { %s84_s21 = sshll.u32 %s1784_s20, 4  ;;  %s27_s25 = sshll.u32 %s1785_s22, 4  ;;  %s85_s21 = int_to_ptr.vmem [resolvable:$true] %s84_s21  ;;  %s28_s25 = int_to_ptr.vmem [resolvable:$true] %s27_s25 }
  0x29   :  { %s1612_s29 = scalar_lea.hbm %s2087_s5, 1024 }
  0x2a   :  { %p1613_p2 = scmp.ne.s32.totalorder %s2087_s5, %s1612_s29  ;;  %p1616_p3 = scmp.lt.u32.totalorder %s1612_s29, %s2087_s5 }
  0x2c   :  { %p1618_p4 = pnand %p1616_p3, %p1613_p2 }
  0x2e   :  { %1621 = shalt.err (!%p1618_p4)
}
  0x2f   :  { %s1622_s3 = scalar_lea.vmem %s85_s21, 1024  ;;  %p1627_p6 = scmp.lt.s32.totalorder %s85_s21, %s85_s21 }
  0x30   :  { %p1623_p5 = scmp.ne.s32.totalorder %s85_s21, %s1622_s3  ;;  %p1628_p7 = scmp.lt.s32.totalorder %s1622_s3, %s1622_s3 }
  0x32   :  { %p1629_p8 = por %p1628_p7, %p1627_p6 }
  0x34   :  { %p1630_p9 = pnand %p1629_p8, %p1623_p5 }
  0x36   :  { %1633 = shalt.err (!%p1630_p9)
}
  0x37   :  { %90 = dma.hbm_to_vmem [thread:$0]  %s2087_s5, 1024, %s85_s21, [#allocation12], %s1782_s1, %s1782_s1, %s1783_s14  }
  0x38   :  { %s1634_s18 = scalar_lea.hbm %s2082_s0, 128 }
  0x39   :  { %p1635_p10 = scmp.ne.s32.totalorder %s2082_s0, %s1634_s18  ;;  %p1638_p11 = scmp.lt.u32.totalorder %s1634_s18, %s2082_s0 }
  0x3b   :  { %p1640_p12 = pnand %p1638_p11, %p1635_p10 }
  0x3d   :  { %1643 = shalt.err (!%p1640_p12)
}
  0x3e   :  { %s1644_s27 = scalar_lea.vmem %s28_s25, 128  ;;  %p1649_p0 = scmp.lt.s32.totalorder %s28_s25, %s28_s25 }
  0x3f   :  { %p1645_p13 = scmp.ne.s32.totalorder %s28_s25, %s1644_s27  ;;  %p1650_p1 = scmp.lt.s32.totalorder %s1644_s27, %s1644_s27 }
  0x41   :  { %p1651_p2 = por %p1650_p1, %p1649_p0 }
  0x43   :  { %p1652_p3 = pnand %p1651_p2, %p1645_p13 }
  0x45   :  { %1655 = shalt.err (!%p1652_p3)
}
  0x46   :  { %30 = dma.hbm_to_vmem [thread:$0]  %s2082_s0, 128, %s28_s25, [#allocation3]  }
  0x47   :  { %s1786_s29 = smov [#allocation7]   ;;  %s1787_s11 = smov [#allocation10]  }
  0x48   :  { %s48_s30 = sshll.u32 %s1786_s29, 4  ;;  %s72_s12 = sshll.u32 %s1787_s11, 4  ;;  %s49_s30 = int_to_ptr.vmem [resolvable:$true] %s48_s30  ;;  %s1906_s12 = int_to_ptr.vmem [resolvable:$true] %s72_s12 }
  0x49   :  { %s1656_s28 = scalar_lea.hbm %s2084_s2, 4096 }
  0x4a   :  { %p1657_p4 = scmp.ne.s32.totalorder %s2084_s2, %s1656_s28  ;;  %p1660_p5 = scmp.lt.u32.totalorder %s1656_s28, %s2084_s2 }
  0x4c   :  { %p1662_p6 = pnand %p1660_p5, %p1657_p4 }
  0x4e   :  { %1665 = shalt.err (!%p1662_p6)
}
  0x4f   :  { %s1666_s0 = scalar_lea.vmem %s49_s30, 4096  ;;  %p1671_p8 = scmp.lt.s32.totalorder %s49_s30, %s49_s30 }
  0x50   :  { %p1667_p7 = scmp.ne.s32.totalorder %s49_s30, %s1666_s0  ;;  %p1672_p9 = scmp.lt.s32.totalorder %s1666_s0, %s1666_s0 }
  0x52   :  { %p1673_p10 = por %p1672_p9, %p1671_p8 }
  0x54   :  { %p1674_p11 = pnand %p1673_p10, %p1667_p7 }
  0x56   :  { %1677 = shalt.err (!%p1674_p11)
}
  0x57   :  { %54 = dma.hbm_to_vmem [thread:$0]  %s2084_s2, 4096, %s49_s30, [#allocation6], %s1779_s23, %s1779_s23, %s1780_s24  }
  0x58   :  { %s1678_s26 = scalar_lea.hbm %s2086_s4, 1024 }
  0x59   :  { %p1679_p12 = scmp.ne.s32.totalorder %s2086_s4, %s1678_s26  ;;  %p1682_p13 = scmp.lt.u32.totalorder %s1678_s26, %s2086_s4 }
  0x5b   :  { %p1684_p0 = pnand %p1682_p13, %p1679_p12 }
  0x5d   :  { %1687 = shalt.err (!%p1684_p0)
}
  0x5e   :  { %s1688_s11 = scalar_lea.vmem %s1906_s12, 1024  ;;  %p1693_p2 = scmp.lt.s32.totalorder %s1906_s12, %s1906_s12 }
  0x5f   :  { %p1689_p1 = scmp.ne.s32.totalorder %s1906_s12, %s1688_s11  ;;  %p1694_p3 = scmp.lt.s32.totalorder %s1688_s11, %s1688_s11 }
  0x61   :  { %p1695_p4 = por %p1694_p3, %p1693_p2 }
  0x63   :  { %p1696_p5 = pnand %p1695_p4, %p1689_p1 }
  0x65   :  { %1699 = shalt.err (!%p1696_p5)
}
  0x66   :  { %78 = dma.hbm_to_vmem [thread:$0]  %s2086_s4, 1024, %s1906_s12, [#allocation9], %s1782_s1, %s1782_s1, %s1783_s14  }
  0x67   :  { %s1788_s24 = smov [#allocation13]   ;;  %s1789_s13 = smov [#allocation14]  }
  0x68   :  { %s98_s30 = sshll.u32 %s1788_s24, 4  ;;  %s110_s3 = sshll.u32 %s1789_s13, 4  ;;  %s99_s30 = int_to_ptr.vmem [resolvable:$true] %s98_s30  ;;  %s1943_s3 = int_to_ptr.vmem [resolvable:$true] %s110_s3 }
  0x69   :  { %s1700_s16 = scalar_lea.hbm %s2089_s7, 1024 }
  0x6a   :  { %p1701_p6 = scmp.ne.s32.totalorder %s2089_s7, %s1700_s16  ;;  %p1704_p7 = scmp.lt.u32.totalorder %s1700_s16, %s2089_s7 }
  0x6c   :  { %p1706_p8 = pnand %p1704_p7, %p1701_p6 }
  0x6e   :  { %1709 = shalt.err (!%p1706_p8)
}
  0x6f   :  { %s1710_s4 = scalar_lea.vmem %s99_s30, 1024  ;;  %p1715_p10 = scmp.lt.s32.totalorder %s99_s30, %s99_s30 }
  0x70   :  { %p1711_p9 = scmp.ne.s32.totalorder %s99_s30, %s1710_s4  ;;  %p1716_p11 = scmp.lt.s32.totalorder %s1710_s4, %s1710_s4 }
  0x72   :  { %p1717_p12 = por %p1716_p11, %p1715_p10 }
  0x74   :  { %p1718_p13 = pnand %p1717_p12, %p1711_p9 }
  0x76   :  { %1721 = shalt.err (!%p1718_p13)
}
  0x77   :  { %104 = dma.hbm_to_vmem [thread:$0]  %s2089_s7, 1024, %s99_s30, [#allocation12], %s1782_s1, %s1782_s1, %s1783_s14  }
  0x78   :  { %s1722_s26 = scalar_lea.hbm %s2090_s8, 1024 }
  0x79   :  { %p1723_p0 = scmp.ne.s32.totalorder %s2090_s8, %s1722_s26  ;;  %p1726_p1 = scmp.lt.u32.totalorder %s1722_s26, %s2090_s8 }
  0x7b   :  { %p1728_p2 = pnand %p1726_p1, %p1723_p0 }
  0x7d   :  { %1731 = shalt.err (!%p1728_p2)
}
  0x7e   :  { %s1732_s11 = scalar_lea.vmem %s1943_s3, 1024  ;;  %p1737_p4 = scmp.lt.s32.totalorder %s1943_s3, %s1943_s3 }
  0x7f   :  { %p1733_p3 = scmp.ne.s32.totalorder %s1943_s3, %s1732_s11  ;;  %p1738_p5 = scmp.lt.s32.totalorder %s1732_s11, %s1732_s11 }
  0x81   :  { %p1739_p6 = por %p1738_p5, %p1737_p4 }
  0x83   :  { %p1740_p7 = pnand %p1739_p6, %p1733_p3 }
  0x85   :  { %1743 = shalt.err (!%p1740_p7)
}
  0x86   :  { %116 = dma.hbm_to_vmem [thread:$0]  %s2090_s8, 1024, %s1943_s3, [#allocation15], %s1782_s1, %s1782_s1, %s1783_s14  }
  0x87   :  { %1766 = dma.done.wait [#allocation3], 128  }
  0x88   :  { %1767 = vsyncadd [#allocation3], 4294967168 }
  0x89   :  { %1768 = dma.done.wait [#allocation6], 4608  }
  0x8a   :  { %1769 = vsyncadd [#allocation6], 4294962688 }
  0x8b   :  { %1770 = dma.done.wait [#allocation9], 3072  }
  0x8c   :  { %1771 = vsyncadd [#allocation9], 4294964224 }
  0x8d   :  { %1772 = dma.done.wait [#allocation12], 2048  }
  0x8e   :  { %1773 = vsyncadd [#allocation12], 4294965248 }
  0x8f   :  { %1774 = dma.done.wait [#allocation15], 1024  }
  0x90   :  { %1775 = vsyncadd [#allocation15], 4294966272  ;;  %v1790_v0 = vmov 0   ;;  %v1464_v1 = vld [vmem:[#allocation5 + $0x4] ss:$8 sps:$4 sm:$0xff]   ;;  %v144_v5 = vld [vmem:[#allocation2] sm:$0xff]  ;;  %v152_v51 = vlaneseq }
  0x91   :  { %218 = vmatprep.mubr.bf16.mxu0 %v1790_v0  ;;  %v1466_v2 = vld [vmem:[#allocation5] ss:$8 sps:$4 sm:$0xff]   ;;  %186 = vmatprep.subr.bf16.mxu0 %v1464_v1  ;;  %v1467_v3 = vld [vmem:[#allocation5 + $0x14] ss:$8 sps:$4 sm:$0xff]   ;;  %v1469_v4 = vld [vmem:[#allocation5 + $0x10] ss:$8 sps:$4 sm:$0xff]   ;;  %v1980_v9 = vpack.c.bf16 %v144_v5, %v144_v5 }
  0x92   :  { %187 = vmatpush1.bf16.msra.mxu0 %v1466_v2  ;;  %v1470_v6 = vld [vmem:[#allocation7 + $0x4] ss:$8 sps:$4 sm:$0xff]   ;;  %v1472_v7 = vld [vmem:[#allocation7] ss:$8 sps:$4 sm:$0xff]   ;;  %v1473_v8 = vld [vmem:[#allocation7 + $0x14] ss:$8 sps:$4 sm:$0xff]  }
  0x93   :  { %188 = vmatprep.subr.bf16.mxu0 %v1467_v3  ;;  %436 = vmatprep.subr.bf16.mxu1 %v1470_v6  ;;  %v1475_v10 = vld [vmem:[#allocation7 + $0x10] ss:$8 sps:$4 sm:$0xff]   ;;  %vm182_vm0 = vcmask 261120   ;;  %v1476_v11 = vld [vmem:[#allocation7 + $0x24] ss:$8 sps:$4 sm:$0xff]   ;;  %v153_v52 = vshrl.u32 %v152_v51, 7 }
  0x94   :  { %437 = vmatpush1.bf16.msra.mxu1 %v1472_v7  ;;  %v1478_v12 = vld [vmem:[#allocation7 + $0x20] ss:$8 sps:$4 sm:$0xff]   ;;  %v1479_v13 = vld [vmem:[#allocation7 + $0x34] ss:$8 sps:$4 sm:$0xff]   ;;  %v1481_v14 = vld [vmem:[#allocation7 + $0x30] ss:$8 sps:$4 sm:$0xff]  }
  0x95   :  { %438 = vmatprep.subr.bf16.mxu1 %v1473_v8  ;;  %v1482_v15 = vld [vmem:[#allocation7 + $0x44] ss:$8 sps:$4 sm:$0xff]   ;;  %v1484_v16 = vld [vmem:[#allocation7 + $0x40] ss:$8 sps:$4 sm:$0xff]   ;;  %v1485_v17 = vld [vmem:[#allocation7 + $0x54] ss:$8 sps:$4 sm:$0xff]  }
  0x96   :  { %189 = vmatpush1.bf16.msra.mxu0 %v1469_v4  ;;  %v1487_v18 = vld [vmem:[#allocation7 + $0x50] ss:$8 sps:$4 sm:$0xff]   ;;  %v1488_v19 = vld [vmem:[#allocation7 + $0x64] ss:$8 sps:$4 sm:$0xff]   ;;  %v1490_v20 = vld [vmem:[#allocation7 + $0x60] ss:$8 sps:$4 sm:$0xff]  }
  0x97   :  { %v1491_v21 = vld [vmem:[#allocation7 + $0x74] ss:$8 sps:$4 sm:$0xff]   ;;  %v1493_v22 = vld [vmem:[#allocation7 + $0x70] ss:$8 sps:$4 sm:$0xff]   ;;  %v1494_v23 = vld [vmem:[#allocation7 + $0x84] ss:$8 sps:$4 sm:$0xff]  }
  0x98   :  { %439 = vmatpush1.bf16.msra.mxu1 %v1475_v10  ;;  %v1496_v24 = vld [vmem:[#allocation7 + $0x80] ss:$8 sps:$4 sm:$0xff]   ;;  %v1497_v25 = vld [vmem:[#allocation7 + $0x94] ss:$8 sps:$4 sm:$0xff]   ;;  %v1499_v26 = vld [vmem:[#allocation7 + $0x90] ss:$8 sps:$4 sm:$0xff]  }
  0x99   :  { %1202 = vmatmul.mubr.msk.bf16.vlgmr.msra.gmra.mrb[0].mxu0 %vm182_vm0, %v1980_v9  ;;  %440 = vmatprep.subr.bf16.mxu1 %v1476_v11  ;;  %v1500_v27 = vld [vmem:[#allocation7 + $0xa4] ss:$8 sps:$4 sm:$0xff]   ;;  %v1502_v28 = vld [vmem:[#allocation7 + $0xa0] ss:$8 sps:$4 sm:$0xff]   ;;  %v1503_v29 = vld [vmem:[#allocation7 + $0xb4] ss:$8 sps:$4 sm:$0xff]  }
  0x9a   :  { %v1505_v30 = vld [vmem:[#allocation7 + $0xb0] ss:$8 sps:$4 sm:$0xff]   ;;  %v1506_v31 = vld [vmem:[#allocation7 + $0xc4] ss:$8 sps:$4 sm:$0xff]   ;;  %v1508_v32 = vld [vmem:[#allocation7 + $0xc0] ss:$8 sps:$4 sm:$0xff]  }
  0x9b   :  { %v1509_v33 = vld [vmem:[#allocation7 + $0xd4] ss:$8 sps:$4 sm:$0xff]   ;;  %v1511_v34 = vld [vmem:[#allocation7 + $0xd0] ss:$8 sps:$4 sm:$0xff]   ;;  %v1512_v35 = vld [vmem:[#allocation7 + $0xe4] ss:$8 sps:$4 sm:$0xff]  }
  0x9c   :  { %441 = vmatpush1.bf16.msra.mxu1 %v1478_v12  ;;  %v1514_v36 = vld [vmem:[#allocation7 + $0xe0] ss:$8 sps:$4 sm:$0xff]   ;;  %v1515_v37 = vld [vmem:[#allocation7 + $0xf4] ss:$8 sps:$4 sm:$0xff]   ;;  %v1517_v38 = vld [vmem:[#allocation7 + $0xf0] ss:$8 sps:$4 sm:$0xff]  }
  0x9d   :  { %442 = vmatprep.subr.bf16.mxu1 %v1479_v13  ;;  %v1518_v39 = vld [vmem:[#allocation8 + $0x40] sm:$0xff]   ;;  %v1520_v41 = vld [vmem:[#allocation8 + $0x48] sm:$0xff]   ;;  %v1522_v43 = vld [vmem:[#allocation8 + $0x50] sm:$0xff]   ;;  %v1984_v53 = vsub.s32 0, %v153_v52  ;;  %v158_v55 = vsub.s32 1, %v153_v52  ;;  %v1791_v8 = vmov 0.0  }
  0x9e   :  { %v1519_v40 = vld [vmem:[#allocation8] sm:$0xff]   ;;  %1293 = vmatprep.subr.bf16.mxu0 %v1518_v39  ;;  %v1521_v42 = vld [vmem:[#allocation8 + $0x8] sm:$0xff]   ;;  %v1523_v44 = vld [vmem:[#allocation8 + $0x10] sm:$0xff]   ;;  %vm1792_vm1 = vmmov 0   ;;  %s1793_s22 = smov [#allocation16]  }
  0x9f   :  { %1294 = vmatpush3.bf16.msra.mxu0 %v1519_v40  ;;  %v1524_v45 = vld [vmem:[#allocation8 + $0x58] sm:$0xff]   ;;  %v1526_v47 = vld [vmem:[#allocation8 + $0x60] sm:$0xff]   ;;  %v1528_v49 = vld [vmem:[#allocation8 + $0x68] sm:$0xff]   ;;  %s1185_s26 = sshll.u32 %s1793_s22, 4  ;;  %s1186_s26 = int_to_ptr.vmem [resolvable:$true] %s1185_s26 }
  0xa0   :  { %443 = vmatpush1.bf16.msra.mxu1 %v1481_v14  ;;  %1295 = vmatprep.subr.bf16.mxu0 %v1520_v41  ;;  %v1525_v46 = vld [vmem:[#allocation8 + $0x18] sm:$0xff]   ;;  %v1527_v48 = vld [vmem:[#allocation8 + $0x20] sm:$0xff]   ;;  %v1529_v50 = vld [vmem:[#allocation8 + $0x28] sm:$0xff]   ;;  %s1744_s27 = scalar_lea.vmem %s1186_s26, 128  ;;  %p1749_p9 = scmp.lt.s32.totalorder %s1186_s26, %s1186_s26 }
  0xa1   :  { %444 = vmatprep.subr.bf16.mxu1 %v1482_v15  ;;  %v150_v54 = vld [vmem:[%s2091_s9] sm:$0x3]  ;;  %v1530_v4 = vld [vmem:[#allocation8 + $0x70] sm:$0xff]   ;;  %v1203_v10 = vld [vmem:[%s2091_s9 + $0x2] sm:$0x3]  ;;  %p1745_p8 = scmp.ne.s32.totalorder %s1186_s26, %s1744_s27  ;;  %p1750_p10 = scmp.lt.s32.totalorder %s1744_s27, %s1744_s27 }
  0xa2   :  { %v155_v56 = vrot.slane %v150_v54, %v1984_v53  ;;  %v159_v57 = vrot.slane %v150_v54, %v158_v55  ;;  %v1531_v5 = vld [vmem:[#allocation8 + $0x30] sm:$0xff]   ;;  %v1532_v6 = vld [vmem:[#allocation8 + $0x78] sm:$0xff]   ;;  %v269_v11 = vrot.slane %v1203_v10, %v1984_v53  ;;  %v273_v12 = vrot.slane %v1203_v10, %v158_v55  ;;  %v1561_v10 = vld [vmem:[#allocation14 + $0x8] sm:$0xff]  }
  0xa3   :  { %1296 = vmatpush3.bf16.msra.mxu0 %v1521_v42  ;;  %v1533_v7 = vld [vmem:[#allocation8 + $0x38] sm:$0xff]   ;;  %v1551_v51 = vld [vmem:[#allocation13 + $0x10] sm:$0xff]   ;;  %p1751_p11 = por %p1750_p10, %p1749_p9 }
  0xa4   :  { %445 = vmatpush1.bf16.msra.mxu1 %v1484_v16  ;;  %1297 = vmatprep.subr.bf16.mxu0 %v1522_v43  ;;  %v1553_v52 = vld [vmem:[#allocation13 + $0x18] sm:$0xff]   ;;  %v1554_v54 = vld [vmem:[#allocation11 + $0x30] sm:$0xff]  }
  0xa5   :  { %446 = vmatprep.subr.bf16.mxu1 %v1485_v17  ;;  %v1556_v55 = vld [vmem:[#allocation11 + $0x38] sm:$0xff]   ;;  %p1752_p12 = pnand %p1751_p11, %p1745_p8 }
  0xa7   :  { %1298 = vmatpush3.bf16.msra.mxu0 %v1523_v44 }
  0xa8   :  { %447 = vmatpush1.bf16.msra.mxu1 %v1487_v18  ;;  %1299 = vmatprep.subr.bf16.mxu0 %v1524_v45 }
  0xa9   :  { %448 = vmatprep.subr.bf16.mxu1 %v1488_v19 }
  0xab   :  { %1300 = vmatpush3.bf16.msra.mxu0 %v1525_v46  ;;  %v1542_v46 = vld [vmem:[%s2088_s6] sm:$0xff]  }
  0xac   :  { %449 = vmatpush1.bf16.msra.mxu1 %v1490_v20  ;;  %1301 = vmatprep.subr.bf16.mxu0 %v1526_v47 }
  0xad   :  { %450 = vmatprep.subr.bf16.mxu1 %v1491_v21 }
  0xaf   :  { %1302 = vmatpush3.bf16.msra.mxu0 %v1527_v48  ;;  %v1543_v48 = vld [vmem:[%s2088_s6 + $0x8] sm:$0xff]  }
  0xb0   :  { %451 = vmatpush1.bf16.msra.mxu1 %v1493_v22  ;;  %1303 = vmatprep.subr.bf16.mxu0 %v1528_v49  ;;  %v1534_v22 = vld [vmem:[#allocation10] sm:$0xff]  }
  0xb1   :  { %452 = vmatprep.subr.bf16.mxu1 %v1494_v23  ;;  %v1547_v49 = vld [vmem:[#allocation13] sm:$0xff]  }
  0xb3   :  { %1304 = vmatpush3.bf16.msra.mxu0 %v1529_v50  ;;  %v1549_v50 = vld [vmem:[#allocation13 + $0x8] sm:$0xff]  }
  0xb4   :  { %453 = vmatpush1.bf16.msra.mxu1 %v1496_v24  ;;  %1305 = vmatprep.subr.bf16.mxu0 %v1530_v4  ;;  %v1535_v24 = vld [vmem:[#allocation10 + $0x8] sm:$0xff]   ;;  %v1560_v4 = vld [vmem:[#allocation14] sm:$0xff]  }
  0xb5   :  { %454 = vmatprep.subr.bf16.mxu1 %v1497_v25  ;;  %v1536_v25 = vld [vmem:[#allocation10 + $0x10] sm:$0xff]  }
  0xb7   :  { %1306 = vmatpush3.bf16.msra.mxu0 %v1531_v5 }
  0xb8   :  { %455 = vmatpush1.bf16.msra.mxu1 %v1499_v26  ;;  %1307 = vmatprep.subr.bf16.mxu0 %v1532_v6  ;;  %v1537_v26 = vld [vmem:[#allocation10 + $0x18] sm:$0xff]  }
  0xb9   :  { %456 = vmatprep.subr.bf16.mxu1 %v1500_v27  ;;  %v1538_v27 = vld [vmem:[#allocation10 + $0x20] sm:$0xff]  }
  0xbb   :  { %1308 = vmatpush3.bf16.msra.mxu0 %v1533_v7 }
  0xbc   :  { %457 = vmatpush1.bf16.msra.mxu1 %v1502_v28  ;;  %1354 = vmatprep.subr.bf16.mxu0 %v1791_v8  ;;  %v1539_v28 = vld [vmem:[#allocation10 + $0x28] sm:$0xff]  }
  0xbd   :  { %458 = vmatprep.subr.bf16.mxu1 %v1503_v29  ;;  %v1540_v29 = vld [vmem:[#allocation10 + $0x30] sm:$0xff]  }
  0xc0   :  { %459 = vmatpush1.bf16.msra.mxu1 %v1505_v30  ;;  %v1541_v30 = vld [vmem:[#allocation10 + $0x38] sm:$0xff]  }
  0xc1   :  { %460 = vmatprep.subr.bf16.mxu1 %v1506_v31  ;;  %v1544_v31 = vld [vmem:[#allocation11] sm:$0xff]  }
  0xc4   :  { %461 = vmatpush1.bf16.msra.mxu1 %v1508_v32  ;;  %v1545_v32 = vld [vmem:[#allocation11 + $0x8] sm:$0xff]  }
  0xc5   :  { %462 = vmatprep.subr.bf16.mxu1 %v1509_v33  ;;  %v1546_v33 = vld [vmem:[#allocation11 + $0x10] sm:$0xff]  }
  0xc8   :  { %463 = vmatpush1.bf16.msra.mxu1 %v1511_v34  ;;  %v1548_v34 = vld [vmem:[#allocation11 + $0x18] sm:$0xff]  }
  0xc9   :  { %464 = vmatprep.subr.bf16.mxu1 %v1512_v35  ;;  %v1550_v35 = vld [vmem:[#allocation11 + $0x20] sm:$0xff]  }
  0xcc   :  { %465 = vmatpush1.bf16.msra.mxu1 %v1514_v36  ;;  %v1552_v36 = vld [vmem:[#allocation11 + $0x28] sm:$0xff]  }
  0xcd   :  { %466 = vmatprep.subr.bf16.mxu1 %v1515_v37  ;;  %v1236_v37 = vld [vmem:[%s2091_s9 + $0x4] sm:$0x3] }
  0xce   :  { %v519_v39 = vrot.slane %v1236_v37, %v1984_v53 }
  0xd0   :  { %467 = vmatpush1.bf16.msra.mxu1 %v1517_v38 }
  0xd1   :  { %1374 = vmatprep.subr.bf16.mxu1 %v1791_v8 }
 0x16c   :  { %v220_v58 = vpop.f32.mrb[0].mxu0 }
 0x16d   :  { %v221_v59 = vadd.f32 %v220_v58, %v155_v56  ;;  %v222_v60 = vpop.f32.mrb[1].mxu0  ;;  %v1557_v56 = vld [vmem:[#allocation13 + $0x28] sm:$0xff]   ;;  %v1559_v58 = vld [vmem:[#allocation13 + $0x38] sm:$0xff]  }
 0x16e   :  { %v223_v61 = vadd.f32 %v222_v60, %v159_v57  ;;  %v224_v62 = vpop.f32.mrb[2].mxu0  ;;  %v1558_v57 = vld [vmem:[#allocation13 + $0x30] sm:$0xff]  }
 0x16f   :  { %v227_v63 = vmax.f32 %v221_v59, 0.0  ;;  %v225_v0 = vpop.f32.mrb[3].mxu0  ;;  %v1253_v59 = vld [vmem:[%s2091_s9 + $0x6] sm:$0x3] }
 0x170   :  { %v228_v1 = vmax.f32 %v223_v61, 0.0  ;;  %v681_v60 = vrot.slane %v1253_v59, %v1984_v53 }
 0x171   :  { %v229_v3 = vpack.c.bf16 %v227_v63, %v227_v63 }
 0x172   :  { %v230_v2 = vpack.c.bf16 %v228_v1, %v228_v1  ;;  %v1271_v1 = vld [vmem:[%s2091_s9 + $0xa] sm:$0x3] }
 0x173   :  { %v895_v6 = vrot.slane %v1271_v1, %v1984_v53 }
 0x174   :  { %468 = vmatprep.mubr.bf16.mxu1 %v230_v2 }
 0x175   :  { %469 = vmatmul.mubr.bf16.vlgmr.msra.gmra.mrb[0].mxu1 %v229_v3 }
 0x176   :  { %1390 = vmatprep.mubr.msk.bf16.mxu1 %vm1792_vm1, %v1791_v8  ;;  %1375 = vmatpush3.bf16.msra.mxu1 %v1544_v31 }
 0x177   :  { %1376 = vmatprep.subr.bf16.mxu1 %v1791_v8 }
 0x17a   :  { %1377 = vmatpush3.bf16.msra.mxu1 %v1545_v32  ;;  %v1284_v32 = vld [vmem:[%s2091_s9 + $0xe] sm:$0x3] }
 0x17b   :  { %1378 = vmatprep.subr.bf16.mxu1 %v1791_v8 }
 0x17e   :  { %1379 = vmatpush3.bf16.msra.mxu1 %v1546_v33 }
 0x17f   :  { %1380 = vmatprep.subr.bf16.mxu1 %v1791_v8 }
 0x182   :  { %1381 = vmatpush3.bf16.msra.mxu1 %v1548_v34  ;;  %v1087_v34 = vrot.slane %v1284_v32, %v1984_v53 }
 0x183   :  { %1382 = vmatprep.subr.bf16.mxu1 %v1791_v8 }
 0x186   :  { %1383 = vmatpush3.bf16.msra.mxu1 %v1550_v35 }
 0x187   :  { %1384 = vmatprep.subr.bf16.mxu1 %v1791_v8 }
 0x18a   :  { %1385 = vmatpush3.bf16.msra.mxu1 %v1552_v36 }
 0x18b   :  { %1386 = vmatprep.subr.bf16.mxu1 %v1791_v8 }
 0x18e   :  { %1387 = vmatpush3.bf16.msra.mxu1 %v1554_v54 }
 0x18f   :  { %1388 = vmatprep.subr.bf16.mxu1 %v1791_v8 }
 0x192   :  { %1389 = vmatpush3.bf16.msra.mxu1 %v1556_v55 }
 0x193   :  { %1422 = vmatprep.subr.bf16.mxu1 %v1791_v8 }
 0x248   :  { %v470_v13 = vpop.f32.mrb[0].mxu1 }
 0x249   :  { %v471_v14 = vadd.f32 %v470_v13, %v269_v11  ;;  %v472_v15 = vpop.f32.mrb[1].mxu1 }
 0x24a   :  { %v473_v16 = vadd.f32 %v472_v15, %v273_v12  ;;  %v474_v17 = vpop.f32.mrb[2].mxu1 }
 0x24b   :  { %v477_v18 = vmax.f32 %v471_v14, 0.0  ;;  %v475_v19 = vpop.f32.mrb[3].mxu1 }
 0x24c   :  { %v478_v20 = vmax.f32 %v473_v16, 0.0  ;;  %v1562_v16 = vld [vmem:[#allocation14 + $0x10] sm:$0xff]   ;;  %v1564_v19 = vld [vmem:[#allocation14 + $0x20] sm:$0xff]  }
 0x24d   :  { %v479_v23 = vpack.c.bf16 %v477_v18, %v477_v18  ;;  %v1563_v18 = vld [vmem:[#allocation14 + $0x18] sm:$0xff]  }
 0x24e   :  { %v480_v21 = vpack.c.bf16 %v478_v20, %v478_v20  ;;  %v1565_v20 = vld [vmem:[#allocation14 + $0x28] sm:$0xff]  }
 0x250   :  { %649 = vmatprep.mubr.bf16.mxu0 %v480_v21  ;;  %v1566_v21 = vld [vmem:[#allocation14 + $0x30] sm:$0xff]  }
 0x251   :  { %650 = vmatmul.mubr.bf16.vlgmr.msra.gmra.mrb[4].mxu0 %v479_v23  ;;  %v1275_v23 = vld [vmem:[%s2091_s9 + $0xc] sm:$0x3] }
 0x252   :  { %1355 = vmatpush3.bf16.msra.mxu0 %v1534_v22  ;;  %1370 = vmatprep.mubr.msk.bf16.mxu0 %vm1792_vm1, %v1791_v8  ;;  %v1567_v22 = vld [vmem:[#allocation14 + $0x38] sm:$0xff]  }
 0x253   :  { %1356 = vmatprep.subr.bf16.mxu0 %v1791_v8 }
 0x256   :  { %1357 = vmatpush3.bf16.msra.mxu0 %v1535_v24  ;;  %v973_v24 = vrot.slane %v1275_v23, %v1984_v53 }
 0x257   :  { %1358 = vmatprep.subr.bf16.mxu0 %v1791_v8 }
 0x25a   :  { %1359 = vmatpush3.bf16.msra.mxu0 %v1536_v25 }
 0x25b   :  { %1360 = vmatprep.subr.bf16.mxu0 %v1791_v8 }
 0x25e   :  { %1361 = vmatpush3.bf16.msra.mxu0 %v1537_v26 }
 0x25f   :  { %1362 = vmatprep.subr.bf16.mxu0 %v1791_v8 }
 0x262   :  { %1363 = vmatpush3.bf16.msra.mxu0 %v1538_v27 }
 0x263   :  { %1364 = vmatprep.subr.bf16.mxu0 %v1791_v8 }
 0x266   :  { %1365 = vmatpush3.bf16.msra.mxu0 %v1539_v28 }
 0x267   :  { %1366 = vmatprep.subr.bf16.mxu0 %v1791_v8 }
 0x26a   :  { %1367 = vmatpush3.bf16.msra.mxu0 %v1540_v29 }
 0x26b   :  { %1368 = vmatprep.subr.bf16.mxu0 %v1791_v8 }
 0x26e   :  { %1369 = vmatpush3.bf16.msra.mxu0 %v1541_v30 }
 0x26f   :  { %1394 = vmatprep.subr.bf16.mxu0 %v1791_v8 }
 0x324   :  { %v1309_v38 = vpop.f32.mrb[4].mxu0 }
 0x325   :  { %v1310_v40 = vpop.f32.mrb[5].mxu0 }
 0x326   :  { %v1311_v41 = vadd.f32 %v1310_v40, %v1309_v38  ;;  %v1312_v42 = vpop.f32.mrb[6].mxu0 }
 0x327   :  { %v1313_v43 = vpop.f32.mrb[7].mxu0 }
 0x328   :  { %v652_v44 = vadd.f32 %v1311_v41, %v519_v39 }
 0x32a   :  { %v657_v45 = vmax.f32 %v652_v44, 0.0 }
 0x32c   :  { %v658_v47 = vpack.c.bf16 %v657_v45, %v657_v45 }
 0x32e   :  { %1371 = vmatmul.mubr.bf16.vlgmr.msra.gmra.mrb[8].mxu0 %v658_v47 }
 0x32f   :  { %1395 = vmatpush3.bf16.msra.mxu0 %v1542_v46  ;;  %1398 = vmatprep.mubr.msk.bf16.mxu0 %vm1792_vm1, %v1791_v8 }
 0x330   :  { %1396 = vmatprep.subr.bf16.mxu0 %v1791_v8 }
 0x333   :  { %1397 = vmatpush3.bf16.msra.mxu0 %v1543_v48 }
 0x334   :  { %1402 = vmatprep.subr.bf16.mxu0 %v1791_v8 }
 0x336   :  { %1399 = vmatmul.mubr.msk.bf16.vlgmr.msra.gmra.mrb[12].mxu0 %vm182_vm0, %v1980_v9  ;;  %v1555_v9 = vld [vmem:[#allocation13 + $0x20] sm:$0xff]  }
 0x337   :  { %1403 = vmatpush3.bf16.msra.mxu0 %v1547_v49  ;;  %1418 = vmatprep.mubr.msk.bf16.mxu0 %vm1792_vm1, %v1791_v8 }
 0x338   :  { %1404 = vmatprep.subr.bf16.mxu0 %v1791_v8 }
 0x33b   :  { %1405 = vmatpush3.bf16.msra.mxu0 %v1549_v50 }
 0x33c   :  { %1406 = vmatprep.subr.bf16.mxu0 %v1791_v8 }
 0x33f   :  { %1407 = vmatpush3.bf16.msra.mxu0 %v1551_v51 }
 0x340   :  { %1408 = vmatprep.subr.bf16.mxu0 %v1791_v8 }
 0x343   :  { %1409 = vmatpush3.bf16.msra.mxu0 %v1553_v52 }
 0x344   :  { %1410 = vmatprep.subr.bf16.mxu0 %v1791_v8 }
 0x347   :  { %1411 = vmatpush3.bf16.msra.mxu0 %v1555_v9 }
 0x348   :  { %1412 = vmatprep.subr.bf16.mxu0 %v1791_v8 }
 0x34b   :  { %1413 = vmatpush3.bf16.msra.mxu0 %v1557_v56 }
 0x34c   :  { %1414 = vmatprep.subr.bf16.mxu0 %v1791_v8 }
 0x34f   :  { %1415 = vmatpush3.bf16.msra.mxu0 %v1558_v57 }
 0x350   :  { %1416 = vmatprep.subr.bf16.mxu0 %v1791_v8 }
 0x353   :  { %1417 = vmatpush3.bf16.msra.mxu0 %v1559_v58 }
 0x401   :  { %v765_v61 = vpop.f32.mrb[8].mxu0 }
 0x402   :  { %v766_v62 = vadd.f32 %v765_v61, %v681_v60  ;;  %v1372_v63 = vpop.f32.mrb[9].mxu0 }
 0x403   :  { %v768_v0 = vpop.f32.mrb[10].mxu0 }
 0x404   :  { %v771_v2 = vmax.f32 %v766_v62, 0.0  ;;  %v1373_v3 = vpop.f32.mrb[11].mxu0 }
 0x406   :  { %v772_v5 = vpack.c.bf16 %v771_v2, %v771_v2 }
 0x408   :  { %1391 = vmatmul.mubr.bf16.vlgmr.msra.gmra.mrb[4].mxu1 %v772_v5 }
 0x409   :  { %v943_v7 = vpop.f32.mrb[12].mxu0  ;;  %1423 = vmatpush3.bf16.msra.mxu1 %v1560_v4  ;;  %1438 = vmatprep.mubr.msk.bf16.mxu1 %vm1792_vm1, %v1791_v8 }
 0x40a   :  { %v944_v11 = vadd.f32 %v943_v7, %v895_v6  ;;  %v1400_v12 = vpop.f32.mrb[13].mxu0  ;;  %1424 = vmatprep.subr.bf16.mxu1 %v1791_v8 }
 0x40b   :  { %v946_v13 = vpop.f32.mrb[14].mxu0 }
 0x40c   :  { %v949_v14 = vmax.f32 %v944_v11, 0.0  ;;  %v1401_v15 = vpop.f32.mrb[15].mxu0 }
 0x40d   :  { %1425 = vmatpush3.bf16.msra.mxu1 %v1561_v10 }
 0x40e   :  { %v950_v17 = vpack.c.bf16 %v949_v14, %v949_v14  ;;  %1426 = vmatprep.subr.bf16.mxu1 %v1791_v8 }
 0x410   :  { %1419 = vmatmul.mubr.bf16.vlgmr.msra.gmra.mrb[16].mxu0 %v950_v17 }
 0x411   :  { %1427 = vmatpush3.bf16.msra.mxu1 %v1562_v16 }
 0x412   :  { %1428 = vmatprep.subr.bf16.mxu1 %v1791_v8 }
 0x415   :  { %1429 = vmatpush3.bf16.msra.mxu1 %v1563_v18 }
 0x416   :  { %1430 = vmatprep.subr.bf16.mxu1 %v1791_v8 }
 0x419   :  { %1431 = vmatpush3.bf16.msra.mxu1 %v1564_v19 }
 0x41a   :  { %1432 = vmatprep.subr.bf16.mxu1 %v1791_v8 }
 0x41d   :  { %1433 = vmatpush3.bf16.msra.mxu1 %v1565_v20 }
 0x41e   :  { %1434 = vmatprep.subr.bf16.mxu1 %v1791_v8 }
 0x421   :  { %1435 = vmatpush3.bf16.msra.mxu1 %v1566_v21 }
 0x422   :  { %1436 = vmatprep.subr.bf16.mxu1 %v1791_v8  ;;  %v1262_v8 = vld [vmem:[%s2091_s9 + $0x8] sm:$0x3] }
 0x423   :  { %v795_v33 = vrot.slane %v1262_v8, %v1984_v53 }
 0x425   :  { %1437 = vmatpush3.bf16.msra.mxu1 %v1567_v22  ;;  %v1442_v35 = vadd.f32 %v1087_v34, %v795_v33 }
 0x4e3   :  { %v1057_v25 = vpop.f32.mrb[16].mxu0 }
 0x4e4   :  { %v1058_v26 = vadd.f32 %v1057_v25, %v973_v24  ;;  %v1420_v27 = vpop.f32.mrb[17].mxu0 }
 0x4e5   :  { %v1060_v28 = vpop.f32.mrb[18].mxu0 }
 0x4e6   :  { %v1063_v29 = vmax.f32 %v1058_v26, 0.0  ;;  %v1421_v30 = vpop.f32.mrb[19].mxu0 }
 0x4e8   :  { %v1064_v31 = vpack.c.bf16 %v1063_v29, %v1063_v29 }
 0x4ea   :  { %1439 = vmatmul.mubr.bf16.vlgmr.msra.gmra.mrb[4].mxu1 %v1064_v31 }
 0x5bd   :  { %v1171_v36 = vpop.f32.mrb[4].mxu1 }
 0x5be   :  { %v1443_v37 = vadd.f32 %v1442_v35, %v1171_v36  ;;  %v1440_v38 = vpop.f32.mrb[5].mxu1 }
 0x5bf   :  { %v1174_v39 = vpop.f32.mrb[6].mxu1 }
 0x5c0   :  { %1178 = vst [vmem:[#allocation16] sm:$0xff] %v1443_v37  ;;  %v1441_v40 = vpop.f32.mrb[7].mxu1 }
 0x5c1   :  { %1755 = shalt.err (!%p1752_p12)
}
 0x5c2   :  { %s1756_s21 = scalar_lea.hbm %s2092_s10, 128 }
 0x5c3   :  { %p1757_p13 = scmp.ne.s32.totalorder %s2092_s10, %s1756_s21  ;;  %p1760_p0 = scmp.lt.u32.totalorder %s1756_s21, %s2092_s10 }
 0x5c5   :  { %p1762_p1 = pnand %p1760_p0, %p1757_p13 }
 0x5c7   :  { %1765 = shalt.err (!%p1762_p1)
}
 0x5c8   :  { %1188 = dma.vmem_to_hbm [thread:$0]  %s1186_s26, 128, %s2092_s10, [#allocation4]  }
 0x5c9   :  { %1776 = dma.done.wait [#allocation4], 128  }
 0x5ca   :  { %1777 = vsyncadd [#allocation4], 4294967168 }
 0x5cb   :  { %1192 = vsyncpa [#allocation3], 1 }
 0x5cc   :  { %1193 = vsyncpa [#allocation6], 1 }
 0x5cd   :  { %1194 = vsyncpa [#allocation9], 1 }
 0x5ce   :  { %1195 = vsyncpa [#allocation12], 1 }
 0x5cf   :  { %1196 = vsyncpa [#allocation15], 1 }
 0x5d0   :  { %1197 = vsyncpa [#allocation4], 1 }

</bundles_post_ra>
